<compile_context>
chip_gen: v5e
topology: v5e:2x2
jax: 0.10.0
libtpu: 0.0.40
codegen_flags: <defaults>
</compile_context>

<pallas_src>
import math

import jax
import jax.numpy as jnp
from jax.experimental import pallas as pl
from jax.experimental.pallas import tpu as pltpu

LANE = 128          # lane width: last dims / key rows padded to multiples of this
SUBLANE_BF16 = 16   # bf16 packs 2 rows per sublane -> min sublane tile is 16


def _round_up(x, mult):
    return (x + mult - 1) // mult * mult


def _pad_cast(x, shape, dtype):
    pads = [(0, t - s) for s, t in zip(x.shape, shape)]
    return jnp.pad(x, pads).astype(dtype)


def _device_kind():
    try:
        return jax.devices()[0].device_kind.lower()
    except Exception:
        return ""


def _resident_spec(block_shape, index_map):
    """Constant-index block (same tile every grid step): single pipeline buffer
    so it is not pointlessly double-buffered in VMEM."""
    try:
        return pl.BlockSpec(block_shape, index_map, pipeline_mode=pl.Buffered(1))
    except Exception:   # older jax without pipeline_mode / Buffered
        return pl.BlockSpec(block_shape, index_map)


# ---------------------------------------------------------------------------
# Pass 1: key / value projections (runs once, tiled over key rows).
#   lk is produced pre-transposed as (hidden, keys); lv is pre-scaled by
#   1/sqrt(hidden_dim) so the post-softmax scale costs nothing per query tile.
# ---------------------------------------------------------------------------
def _make_kv_projection_kernel(inv_sqrt_hidden):
    def kernel(kT_ref, wkT_ref, bkT_ref, v_ref, wv_ref, bv_ref, lkT_ref, lv_ref):
        lkT = jnp.dot(wkT_ref[...], kT_ref[...],
                      preferred_element_type=jnp.float32) + bkT_ref[...]
        lv = jnp.dot(v_ref[...], wv_ref[...],
                     preferred_element_type=jnp.float32) + bv_ref[...]
        lkT_ref[...] = lkT.astype(lkT_ref.dtype)
        lv_ref[...] = (lv * inv_sqrt_hidden).astype(lv_ref.dtype)
    return kernel


# ---------------------------------------------------------------------------
# Pass 2: per-query-tile projection + attention (hot loop).
# ---------------------------------------------------------------------------
def _attention_kernel(q_ref, wq_ref, bq_ref, mask_ref, lkT_ref, lv_ref, o_ref):
    # Query projection for this tile (bf16 operands, f32 accumulation).
    lq = jnp.dot(q_ref[...], wq_ref[...],
                 preferred_element_type=jnp.float32) + bq_ref[...]

    # logits = lq @ lk^T : plain MXU matmul against the pre-transposed lk.
    logits = jnp.dot(lq.astype(lkT_ref.dtype), lkT_ref[...],
                     preferred_element_type=jnp.float32)

    # Additive key-padding bias (0 for real keys, -1e30 for padded columns),
    # precomputed once in the wrapper (no per-tile iota/compare/where).
    logits = logits + mask_ref[...]

    # Softmax in f32; EUP approximate reciprocal instead of a divide.
    row_max = jnp.max(logits, axis=-1, keepdims=True)
    e = jnp.exp(logits - row_max)
    denom = jnp.sum(e, axis=-1, keepdims=True)
    probs = e * pl.reciprocal(denom, approx=True)

    # NOTE: the PyTorch module applies softmax FIRST and scales by
    # 1/sqrt(hidden_dim) AFTER the softmax; that scale is already folded into
    # lv (pass 1).  Do NOT "fix" this to standard SDPA.
    o_ref[...] = jnp.dot(probs.astype(lv_ref.dtype), lv_ref[...],
                         preferred_element_type=jnp.float32)
    # TODO(synk): nn.Dropout is identity in eval mode; training-mode dropout
    # (stateful PRNG masking) is not implemented here.


def qkv_attention(input_query, input_key, input_value, params, *, tile_n=None):
    """Pallas implementation of QKVAttention.forward (eval mode)."""
    wq, bq, wk, bk, wv, bv = (params["wq"], params["bq"], params["wk"],
                              params["bk"], params["wv"], params["bv"])
    n, d_q = input_query.shape
    m, d_k = input_key.shape
    m2, d_v = input_value.shape
    assert m == m2, "key and value must have the same number of rows"
    hidden_dim = wq.shape[1]
    output_dim = wv.shape[1]

    kind = _device_kind()
    is_v5 = "v5" in kind
    is_v7 = "v7" in kind

    # Lane-dense padded sizes.  Key rows (m) are the lane dim of logits and
    # the contraction dim of probs @ lv -> pad them to 128 as well.
    dq_p = _round_up(d_q, LANE)
    dk_p = _round_up(d_k, LANE)
    dv_p = _round_up(d_v, LANE)
    h_p = _round_up(hidden_dim, LANE)
    o_p = _round_up(output_dim, LANE)
    m_p = _round_up(m, LANE)

    # Per-generation query-tile default.
    mxu_tile = 128 if is_v5 else 256      # v5e: 4x128^2 MXU; v6e/v7x: 2x256^2
    if tile_n is None:
        tile_n = min(mxu_tile, _round_up(n, SUBLANE_BF16))
        if is_v7 and n > SUBLANE_BF16:
            # v7x has 2 TensorCores: prefer >= 2 "parallel" grid steps.
            half = _round_up(-(-n // 2), SUBLANE_BF16)
            tile_n = min(tile_n, max(SUBLANE_BF16, half))
    tile_n = max(SUBLANE_BF16, _round_up(tile_n, SUBLANE_BF16))
    n_p = _round_up(n, tile_n)
    grid_n = n_p // tile_n

    tile_m = min(128, m_p)                # m_p is a multiple of 128
    grid_m = m_p // tile_m

    # Per-generation VMEM budget (resident operands are single-buffered).
    if is_v7:
        vmem_limit = 48 * 1024 * 1024     # 64 MiB/TC physical: leave headroom
    else:
        vmem_limit = 64 * 1024 * 1024     # 128 MiB physical on v5e/v6e
    # TODO(synk): for very large m (m_p*(h_p+o_p)*2B approaching the VMEM
    # budget, esp. on v7x) switch pass 2 to flash-style KV tiling with online
    # softmax instead of keeping all of lk^T / lv resident.

    cdtype = jnp.bfloat16  # MXU operand dtype (f32 accumulation everywhere)

    # Zero-pad + cast.  Zero weight columns / biases keep padded channels 0.
    q_p = _pad_cast(input_query, (n_p, dq_p), cdtype)
    kT_p = _pad_cast(input_key.T, (dk_p, m_p), cdtype)
    v_p = _pad_cast(input_value, (m_p, dv_p), cdtype)
    wq_p = _pad_cast(wq, (dq_p, h_p), cdtype)
    wkT_p = _pad_cast(wk.T, (h_p, dk_p), cdtype)
    wv_p = _pad_cast(wv, (dv_p, o_p), cdtype)
    bq_p = _pad_cast(bq, (1, h_p), jnp.float32)
    bkT_p = _pad_cast(bk.reshape(-1, 1), (h_p, 1), jnp.float32)
    bv_p = _pad_cast(bv, (1, o_p), jnp.float32)

    # Additive key-padding mask, computed once (hoisted out of the hot loop).
    key_mask = jnp.where(jnp.arange(m_p) < m, 0.0, -1e30)
    key_mask = key_mask.astype(jnp.float32).reshape(1, m_p)

    # --- Pass 1: K / V projections (once, tiled over key rows). ---
    proj_cost = pl.CostEstimate(
        flops=2 * m_p * (dk_p * h_p + dv_p * o_p),
        transcendentals=0,
        bytes_accessed=2 * (dk_p * m_p + h_p * dk_p + m_p * dv_p + dv_p * o_p
                            + h_p * m_p + m_p * o_p) + 4 * (h_p + o_p))
    lkT, lv = pl.pallas_call(
        _make_kv_projection_kernel(1.0 / math.sqrt(hidden_dim)),
        out_shape=(jax.ShapeDtypeStruct((h_p, m_p), cdtype),
                   jax.ShapeDtypeStruct((m_p, o_p), cdtype)),
        grid_spec=pltpu.PrefetchScalarGridSpec(
            num_scalar_prefetch=0,
            grid=(grid_m,),
            in_specs=[
                pl.BlockSpec((dk_p, tile_m), lambda i: (0, i)),   # k^T tile
                _resident_spec((h_p, dk_p), lambda i: (0, 0)),    # wk^T
                _resident_spec((h_p, 1), lambda i: (0, 0)),       # bk^T
                pl.BlockSpec((tile_m, dv_p), lambda i: (i, 0)),   # v tile
                _resident_spec((dv_p, o_p), lambda i: (0, 0)),    # wv
                _resident_spec((1, o_p), lambda i: (0, 0)),       # bv
            ],
            out_specs=(
                pl.BlockSpec((h_p, tile_m), lambda i: (0, i)),    # lk^T
                pl.BlockSpec((tile_m, o_p), lambda i: (i, 0)),    # lv (scaled)
            ),
        ),
        cost_estimate=proj_cost,
        compiler_params=pltpu.CompilerParams(
            dimension_semantics=("parallel",),
            vmem_limit_bytes=vmem_limit),
    )(kT_p, wkT_p, bkT_p, v_p, wv_p, bv_p)

    # --- Pass 2: attention, tiled over query rows. ---
    attn_cost = pl.CostEstimate(
        flops=2 * n_p * (dq_p * h_p + h_p * m_p + m_p * o_p),
        transcendentals=n_p * m_p,
        bytes_accessed=2 * (n_p * dq_p + dq_p * h_p + h_p * m_p + m_p * o_p)
                       + 4 * (h_p + m_p + n_p * o_p))
    out_p = pl.pallas_call(
        _attention_kernel,
        out_shape=jax.ShapeDtypeStruct((n_p, o_p), jnp.float32),
        grid_spec=pltpu.PrefetchScalarGridSpec(
            num_scalar_prefetch=0,
            grid=(grid_n,),
            in_specs=[
                pl.BlockSpec((tile_n, dq_p), lambda i: (i, 0)),   # q tile
                _resident_spec((dq_p, h_p), lambda i: (0, 0)),    # wq
                _resident_spec((1, h_p), lambda i: (0, 0)),       # bq
                _resident_spec((1, m_p), lambda i: (0, 0)),       # key-pad bias
                _resident_spec((h_p, m_p), lambda i: (0, 0)),     # lk^T
                _resident_spec((m_p, o_p), lambda i: (0, 0)),     # lv (scaled)
            ],
            out_specs=pl.BlockSpec((tile_n, o_p), lambda i: (i, 0)),
        ),
        cost_estimate=attn_cost,
        compiler_params=pltpu.CompilerParams(
            dimension_semantics=("parallel",),
            vmem_limit_bytes=vmem_limit),
    )(q_p, wq_p, bq_p, key_mask, lkT, lv)

    return out_p[:n, :output_dim]


def init_params(key, query_dim, key_dim, value_dim, hidden_dim, output_dim):
    """Deterministic synthetic parameters (PyTorch-Linear-like uniform init).

    Weights stored as (in_dim, out_dim) (transpose of torch's (out, in)),
    biases as (1, out_dim).
    """
    ks = jax.random.split(key, 6)

    def lin(kw, kb, in_dim, out_dim):
        bound = 1.0 / math.sqrt(in_dim)
        w = jax.random.uniform(kw, (in_dim, out_dim), jnp.float32, -bound, bound)
        b = jax.random.uniform(kb, (1, out_dim), jnp.float32, -bound, bound)
        return w, b

    wq, bq = lin(ks[0], ks[1], query_dim, hidden_dim)
    wk, bk = lin(ks[2], ks[3], key_dim, hidden_dim)
    wv, bv = lin(ks[4], ks[5], value_dim, output_dim)
    return {"wq": wq, "bq": bq, "wk": wk, "bk": bk, "wv": wv, "bv": bv}


def reference(input_query, input_key, input_value, params, hidden_dim):
    """Pure-JAX f32 reference replicating the PyTorch forward (eval mode)."""
    lq = input_query @ params["wq"] + params["bq"]
    lk = input_key @ params["wk"] + params["bk"]
    lv = input_value @ params["wv"] + params["bv"]
    score = jax.nn.softmax(lq @ lk.T, axis=-1) / math.sqrt(hidden_dim)
    return score @ lv


if __name__ == "__main__":
    # Small shapes consistent with the module's forward contract.
    n, m = 80, 20               # query rows / key-value rows (m exercises masking)
    query_dim = 16
    key_dim = 16
    value_dim = 16
    hidden_dim = 32
    output_dim = 32
    dropout_rate = 0.1          # identity in eval mode

    root = jax.random.PRNGKey(0)
    k_params, k_q, k_k, k_v = jax.random.split(root, 4)

    params = init_params(k_params, query_dim, key_dim, value_dim,
                         hidden_dim, output_dim)

    input_query = jax.random.normal(k_q, (n, query_dim), jnp.float32)
    input_key = jax.random.normal(k_k, (m, key_dim), jnp.float32)
    input_value = jax.random.normal(k_v, (m, value_dim), jnp.float32)

    ref = reference(input_query, input_key, input_value, params, hidden_dim)

    def check(out):
        assert out.shape == (n, output_dim)
        # bf16 MXU operands + approximate reciprocal => relative tolerance.
        err = float(jnp.max(jnp.abs(out - ref)))
        scale = float(jnp.max(jnp.abs(ref)))
        assert err <= 5e-2 * scale + 5e-3, (err, scale)

    # Default per-generation tiling.
    out = qkv_attention(input_query, input_key, input_value, params)
    out = jax.block_until_ready(out)
    check(out)

    # Explicit small tile to exercise a multi-step "parallel" grid + padding.
    out2 = qkv_attention(input_query, input_key, input_value, params, tile_n=32)
    out2 = jax.block_until_ready(out2)
    check(out2)

    print("KERNEL_OK")
</pallas_src>

<mosaic_0001>
module attributes {stable_mosaic.version = 11 : i64} {
  func.func @kernel(%arg0: i32, %arg1: memref<128x128xbf16, #tpu.memory_space<vmem>>, %arg2: memref<128x128xbf16, #tpu.memory_space<vmem>>, %arg3: memref<128x1xf32, #tpu.memory_space<vmem>>, %arg4: memref<128x128xbf16, #tpu.memory_space<vmem>>, %arg5: memref<128x128xbf16, #tpu.memory_space<vmem>>, %arg6: memref<1x128xf32, #tpu.memory_space<vmem>>, %arg7: memref<128x128xbf16, #tpu.memory_space<vmem>>, %arg8: memref<128x128xbf16, #tpu.memory_space<vmem>>) attributes {dimension_semantics = [#tpu.dimension_semantics<parallel>], iteration_bounds = array<i64: 1>, scalar_prefetch = 0 : i64, scratch_operands = 0 : i64, tpu.core_type = #tpu.core_type<tc>, window_params = [{transform_indices = @transform_0, window_bounds = array<i64: 128, 128>}, {pipeline_mode = #tpu.pipeline_mode<synchronous>, transform_indices = @transform_1, window_bounds = array<i64: 128, 128>}, {pipeline_mode = #tpu.pipeline_mode<synchronous>, transform_indices = @transform_2, window_bounds = array<i64: 128, 1>}, {transform_indices = @transform_3, window_bounds = array<i64: 128, 128>}, {pipeline_mode = #tpu.pipeline_mode<synchronous>, transform_indices = @transform_4, window_bounds = array<i64: 128, 128>}, {pipeline_mode = #tpu.pipeline_mode<synchronous>, transform_indices = @transform_5, window_bounds = array<i64: 1, 128>}, {transform_indices = @transform_6, window_bounds = array<i64: 128, 128>}, {transform_indices = @transform_7, window_bounds = array<i64: 128, 128>}]} {
    %c0 = arith.constant 0 : index
    %c0_0 = arith.constant 0 : index
    %0 = vector.load %arg2[%c0, %c0_0] : memref<128x128xbf16, #tpu.memory_space<vmem>>, vector<128x128xbf16>
    %c0_1 = arith.constant 0 : index
    %c0_2 = arith.constant 0 : index
    %1 = vector.load %arg1[%c0_1, %c0_2] : memref<128x128xbf16, #tpu.memory_space<vmem>>, vector<128x128xbf16>
    %cst = arith.constant dense<0.000000e+00> : vector<128x128xf32>
    %2 = tpu.matmul %0, %1, %cst {dimension_numbers = #tpu.dot_dimension_numbers<[1], [0], [0], [1], [0, 0, 1, 1], [], []>} : vector<128x128xbf16>, vector<128x128xbf16>, vector<128x128xf32> -> vector<128x128xf32>
    %c0_3 = arith.constant 0 : index
    %c0_4 = arith.constant 0 : index
    %3 = vector.load %arg3[%c0_3, %c0_4] : memref<128x1xf32, #tpu.memory_space<vmem>>, vector<128x1xf32>
    %4 = vector.broadcast %3 : vector<128x1xf32> to vector<128x128xf32>
    %5 = arith.addf %2, %4 : vector<128x128xf32>
    %c0_5 = arith.constant 0 : index
    %c0_6 = arith.constant 0 : index
    %6 = vector.load %arg4[%c0_5, %c0_6] : memref<128x128xbf16, #tpu.memory_space<vmem>>, vector<128x128xbf16>
    %c0_7 = arith.constant 0 : index
    %c0_8 = arith.constant 0 : index
    %7 = vector.load %arg5[%c0_7, %c0_8] : memref<128x128xbf16, #tpu.memory_space<vmem>>, vector<128x128xbf16>
    %cst_9 = arith.constant dense<0.000000e+00> : vector<128x128xf32>
    %8 = tpu.matmul %6, %7, %cst_9 {dimension_numbers = #tpu.dot_dimension_numbers<[1], [0], [0], [1], [0, 0, 1, 1], [], []>} : vector<128x128xbf16>, vector<128x128xbf16>, vector<128x128xf32> -> vector<128x128xf32>
    %c0_10 = arith.constant 0 : index
    %c0_11 = arith.constant 0 : index
    %9 = vector.load %arg6[%c0_10, %c0_11] : memref<1x128xf32, #tpu.memory_space<vmem>>, vector<1x128xf32>
    %10 = vector.broadcast %9 : vector<1x128xf32> to vector<128x128xf32>
    %11 = arith.addf %8, %10 : vector<128x128xf32>
    %12 = arith.truncf %5 : vector<128x128xf32> to vector<128x128xbf16>
    %c0_12 = arith.constant 0 : index
    %c0_13 = arith.constant 0 : index
    %13 = vector.load %arg7[%c0_12, %c0_13] : memref<128x128xbf16, #tpu.memory_space<vmem>>, vector<128x128xbf16>
    tpu.vector_store %arg7[%c0_12, %c0_13], %12 {strides = array<i32>} : memref<128x128xbf16, #tpu.memory_space<vmem>>, vector<128x128xbf16>,
    %cst_14 = arith.constant 0.176776692 : f32
    %14 = vector.broadcast %cst_14 : f32 to vector<128x128xf32>
    %15 = arith.mulf %11, %14 : vector<128x128xf32>
    %16 = arith.truncf %15 : vector<128x128xf32> to vector<128x128xbf16>
    %c0_15 = arith.constant 0 : index
    %c0_16 = arith.constant 0 : index
    %17 = vector.load %arg8[%c0_15, %c0_16] : memref<128x128xbf16, #tpu.memory_space<vmem>>, vector<128x128xbf16>
    tpu.vector_store %arg8[%c0_15, %c0_16], %16 {strides = array<i32>} : memref<128x128xbf16, #tpu.memory_space<vmem>>, vector<128x128xbf16>,
    return
  }
  func.func @transform_0(%arg0: i32) -> (i32, i32) {
    %c0_i32 = arith.constant 0 : i32
    %c0_i32_0 = arith.constant 0 : i32
    return %c0_i32, %arg0 : i32, i32
  }
  func.func @transform_1(%arg0: i32) -> (i32, i32) {
    %c0_i32 = arith.constant 0 : i32
    %c0_i32_0 = arith.constant 0 : i32
    %c0_i32_1 = arith.constant 0 : i32
    return %c0_i32, %c0_i32_0 : i32, i32
  }
  func.func @transform_2(%arg0: i32) -> (i32, i32) {
    %c0_i32 = arith.constant 0 : i32
    %c0_i32_0 = arith.constant 0 : i32
    %c0_i32_1 = arith.constant 0 : i32
    return %c0_i32, %c0_i32_0 : i32, i32
  }
  func.func @transform_3(%arg0: i32) -> (i32, i32) {
    %c0_i32 = arith.constant 0 : i32
    %c0_i32_0 = arith.constant 0 : i32
    return %arg0, %c0_i32 : i32, i32
  }
  func.func @transform_4(%arg0: i32) -> (i32, i32) {
    %c0_i32 = arith.constant 0 : i32
    %c0_i32_0 = arith.constant 0 : i32
    %c0_i32_1 = arith.constant 0 : i32
    return %c0_i32, %c0_i32_0 : i32, i32
  }
  func.func @transform_5(%arg0: i32) -> (i32, i32) {
    %c0_i32 = arith.constant 0 : i32
    %c0_i32_0 = arith.constant 0 : i32
    %c0_i32_1 = arith.constant 0 : i32
    return %c0_i32, %c0_i32_0 : i32, i32
  }
  func.func @transform_6(%arg0: i32) -> (i32, i32) {
    %c0_i32 = arith.constant 0 : i32
    %c0_i32_0 = arith.constant 0 : i32
    return %c0_i32, %arg0 : i32, i32
  }
  func.func @transform_7(%arg0: i32) -> (i32, i32) {
    %c0_i32 = arith.constant 0 : i32
    %c0_i32_0 = arith.constant 0 : i32
    return %arg0, %c0_i32 : i32, i32
  }
}

</mosaic_0001>

<bundles_post_ra>
// kernel: tpu_custom_call.1
= control target key start
LH: loop header
LB: loop body
LE: loop exit
PB: predicated region body
PF: predicated region fallthrough
CT: control target
= control target key end

     0   :  { %13 = vsyncpa [#allocation3], 0  ;;  %s1216_s0 = inlined_call_operand.vmem [shape: bf16[128,128], index: 0, kind: input, shape index: {}]   ;;  %s1217_s1 = inlined_call_operand.vmem [shape: bf16[128,128], index: 1, kind: input, shape index: {}]   ;;  %s1218_s2 = inlined_call_operand.vmem [shape: f32[128,1], index: 2, kind: input, shape index: {}]   ;;  %s1219_s3 = inlined_call_operand.hbm [shape: bf16[128,128], index: 3, kind: input, shape index: {}]   ;;  %s1220_s4 = inlined_call_operand.hbm [shape: bf16[128,128], index: 4, kind: input, shape index: {}]   ;;  %s1221_s5 = inlined_call_operand.vmem [shape: f32[1,128], index: 5, kind: input, shape index: {}]   ;;  %s1222_s6 = inlined_call_operand.hbm [shape: bf16[128,128], index: 6, kind: output, shape index: {0}]   ;;  %s1223_s7 = inlined_call_operand.hbm [shape: bf16[128,128], index: 7, kind: output, shape index: {1}]  }
   0x1   :  { %14 = vsyncpa [#allocation6], 0 }
   0x2   :  { %15 = vsyncpa [#allocation4], 0 }
   0x3   :  { %16 = vsyncpa [#allocation9], 0  ;;  %s27_s26 = sshll.u32 %s1219_s3, 4  ;;  %s1016_s27 = smov [#allocation2]   ;;  %s28_s26 = int_to_ptr.hbm [resolvable:$true] %s27_s26 }
   0x4   :  { %s29_s28 = sshll.u32 %s1016_s27, 4  ;;  %s40_s8 = sshll.u32 %s1220_s4, 4  ;;  %s30_s28 = int_to_ptr.vmem [resolvable:$true] %s29_s28  ;;  %s41_s8 = int_to_ptr.hbm [resolvable:$true] %s40_s8 }
   0x5   :  { %s1017_s9 = smov 64   ;;  %s1018_s10 = smov 4  }
   0x6   :  { %35 = dma.hbm_to_vmem [thread:$0]  %s28_s26, 1024, %s30_s28, [#allocation3], %s1017_s9, %s1017_s9, %s1018_s10  }
   0x7   :  { %s1019_s11 = smov [#allocation5]  }
   0x8   :  { %s42_s12 = sshll.u32 %s1019_s11, 4  ;;  %s43_s12 = int_to_ptr.vmem [resolvable:$true] %s42_s12 }
   0x9   :  { %48 = dma.hbm_to_vmem [thread:$0]  %s41_s8, 1024, %s43_s12, [#allocation6], %s1017_s9, %s1017_s9, %s1018_s10  }
   0xa   :  { %1008 = dma.done.wait [#allocation3], 1024  }
   0xb   :  { %1009 = vsyncadd [#allocation3], 4294966272 }
   0xc   :  { %1010 = dma.done.wait [#allocation6], 1024  }
   0xd   :  { %1011 = vsyncadd [#allocation6], 4294966272  ;;  %v1020_v0 = vmov 0   ;;  %v774_v1 = vld [vmem:[%s1216_s0 + $0x38] sm:$0xff]  ;;  %v773_v3 = vld [vmem:[%s1216_s0 + $0x30] sm:$0xff]  ;;  %s599_s30 = sshll.u32 %s1222_s6, 4  ;;  %s600_s30 = int_to_ptr.hbm [resolvable:$true] %s599_s30 }
   0xe   :  { %908 = vset.pattern.permute.xlu0 %v1020_v0  ;;  %909 = vset.pattern.permute.xlu1 %v1020_v0  ;;  %v790_v2 = vld [vmem:[#allocation5 + $0x38] sm:$0xff]  ;;  %v789_v4 = vld [vmem:[#allocation5 + $0x30] sm:$0xff]  ;;  %v91_v5 = vld [vmem:[%s1218_s2] sm:$0xff]  ;;  %s1022_s8 = smov [#allocation8]   ;;  %s612_s4 = sshll.u32 %s1223_s7, 4  ;;  %s613_s4 = int_to_ptr.hbm [resolvable:$true] %s612_s4 }
   0xf   :  { %910 = vset.pattern.permute.xlu2 %v1020_v0  ;;  %283 = vmatpush.bf16.msra.mxu0 %v774_v1  ;;  %v772_v6 = vld [vmem:[%s1216_s0 + $0x28] sm:$0xff]  ;;  %v93_v8 = vld [vmem:[%s1218_s2 + $0x10] sm:$0xff]  ;;  %v771_v9 = vld [vmem:[%s1216_s0 + $0x20] sm:$0xff]  ;;  %s610_s11 = sshll.u32 %s1022_s8, 4  ;;  %s611_s11 = int_to_ptr.vmem [resolvable:$true] %s610_s11 }
  0x10   :  { %885 = vmatpush.bf16.msra.mxu2 %v774_v1  ;;  %464 = vmatpush.bf16.msra.mxu1 %v790_v2  ;;  %v788_v7 = vld [vmem:[#allocation5 + $0x28] sm:$0xff]  ;;  %v787_v11 = vld [vmem:[#allocation5 + $0x20] sm:$0xff]  ;;  %v770_v12 = vld [vmem:[%s1216_s0 + $0x18] sm:$0xff] }
  0x11   :  { %893 = vmatpush.bf16.msra.mxu3 %v790_v2  ;;  %109 = vperm.xlu0 %908, %v91_v5   ;;  %v92_v10 = vld [vmem:[%s1218_s2 + $0x8] sm:$0xff]  ;;  %v786_v13 = vld [vmem:[#allocation5 + $0x18] sm:$0xff]  ;;  %v769_v14 = vld [vmem:[%s1216_s0 + $0x10] sm:$0xff] }
  0x12   :  { %119 = vperm.xlu1 %909, %v93_v8   ;;  %v97_v15 = vld [vmem:[%s1218_s2 + $0x30] sm:$0xff]  ;;  %v94_v16 = vld [vmem:[%s1218_s2 + $0x18] sm:$0xff]  ;;  %v95_v17 = vld [vmem:[%s1218_s2 + $0x20] sm:$0xff] }
  0x13   :  { %284 = vmatpush.bf16.msra.mxu0 %v773_v3  ;;  %v785_v18 = vld [vmem:[#allocation5 + $0x10] sm:$0xff]  ;;  %129 = vperm.xlu2 %910, %v95_v17   ;;  %v768_v19 = vld [vmem:[%s1216_s0 + $0x8] sm:$0xff]  ;;  %v98_v21 = vld [vmem:[%s1218_s2 + $0x38] sm:$0xff] }
  0x14   :  { %886 = vmatpush.bf16.msra.mxu2 %v773_v3  ;;  %465 = vmatpush.bf16.msra.mxu1 %v789_v4  ;;  %v784_v20 = vld [vmem:[#allocation5 + $0x8] sm:$0xff]  ;;  %v767_v22 = vld [vmem:[%s1216_s0] sm:$0xff]  ;;  %v101_v31 = vld [vmem:[%s1218_s2 + $0x50] sm:$0xff] }
  0x15   :  { %894 = vmatpush.bf16.msra.mxu3 %v789_v4  ;;  %v100_v23 = vld [vmem:[%s1218_s2 + $0x48] sm:$0xff]  ;;  %v783_v24 = vld [vmem:[#allocation5] sm:$0xff]  ;;  %v106_v34 = vld [vmem:[%s1218_s2 + $0x78] sm:$0xff] }
  0x16   :  { %v759_v25 = vld [vmem:[%s1217_s1] sm:$0xff]  ;;  %v96_v30 = vld [vmem:[%s1218_s2 + $0x28] sm:$0xff]  ;;  %v102_v39 = vld [vmem:[%s1218_s2 + $0x58] sm:$0xff] }
  0x17   :  { %285 = vmatpush.bf16.msra.mxu0 %v772_v6  ;;  %v763_v26 = vld [vmem:[%s1217_s1 + $0x20] sm:$0xff]  ;;  %v104_v33 = vld [vmem:[%s1218_s2 + $0x68] sm:$0xff]  ;;  %v105_v40 = vld [vmem:[%s1218_s2 + $0x70] sm:$0xff] }
  0x18   :  { %887 = vmatpush.bf16.msra.mxu2 %v772_v6  ;;  %466 = vmatpush.bf16.msra.mxu1 %v788_v7  ;;  %v775_v27 = vld [vmem:[#allocation2] sm:$0xff]  ;;  %v760_v35 = vld [vmem:[%s1217_s1 + $0x8] sm:$0xff]  ;;  %v761_v41 = vld [vmem:[%s1217_s1 + $0x10] sm:$0xff] }
  0x19   :  { %895 = vmatpush.bf16.msra.mxu3 %v788_v7  ;;  %114 = vperm.xlu0 %908, %v92_v10   ;;  %v779_v28 = vld [vmem:[#allocation2 + $0x20] sm:$0xff]  ;;  %v764_v36 = vld [vmem:[%s1217_s1 + $0x28] sm:$0xff]  ;;  %v765_v42 = vld [vmem:[%s1217_s1 + $0x30] sm:$0xff] }
  0x1a   :  { %124 = vperm.xlu1 %909, %v94_v16   ;;  %v103_v29 = vld [vmem:[%s1218_s2 + $0x60] sm:$0xff]  ;;  %v776_v37 = vld [vmem:[#allocation2 + $0x8] sm:$0xff]  ;;  %v777_v43 = vld [vmem:[#allocation2 + $0x10] sm:$0xff] }
  0x1b   :  { %286 = vmatpush.bf16.msra.mxu0 %v771_v9  ;;  %134 = vperm.xlu2 %910, %v96_v30   ;;  %v99_v32 = vld [vmem:[%s1218_s2 + $0x40] sm:$0xff]  ;;  %v780_v38 = vld [vmem:[#allocation2 + $0x28] sm:$0xff]  ;;  %v781_v44 = vld [vmem:[#allocation2 + $0x30] sm:$0xff] }
  0x1c   :  { %888 = vmatpush.bf16.msra.mxu2 %v771_v9  ;;  %467 = vmatpush.bf16.msra.mxu1 %v787_v11  ;;  %v762_v45 = vld [vmem:[%s1217_s1 + $0x18] sm:$0xff]  ;;  %v1178_v56 = vld [vmem:[%s1221_s5] ss:$0 sm:$0xff] }
  0x1d   :  { %896 = vmatpush.bf16.msra.mxu3 %v787_v11  ;;  %v766_v46 = vld [vmem:[%s1217_s1 + $0x38] sm:$0xff]  ;;  %s1021_s1 = smov [#allocation7]  }
  0x1e   :  { %v778_v47 = vld [vmem:[#allocation2 + $0x18] sm:$0xff]  ;;  %s597_s5 = sshll.u32 %s1021_s1, 4  ;;  %s598_s5 = int_to_ptr.vmem [resolvable:$true] %s597_s5 }
  0x1f   :  { %287 = vmatpush.bf16.msra.mxu0 %v770_v12  ;;  %v782_v48 = vld [vmem:[#allocation2 + $0x38] sm:$0xff] }
  0x20   :  { %889 = vmatpush.bf16.msra.mxu2 %v770_v12  ;;  %468 = vmatpush.bf16.msra.mxu1 %v786_v13 }
  0x21   :  { %897 = vmatpush.bf16.msra.mxu3 %v786_v13  ;;  %139 = vperm.xlu0 %908, %v97_v15  }
  0x22   :  { %144 = vperm.xlu1 %909, %v98_v21  }
  0x23   :  { %288 = vmatpush.bf16.msra.mxu0 %v769_v14  ;;  %149 = vperm.xlu2 %910, %v99_v32  }
  0x24   :  { %890 = vmatpush.bf16.msra.mxu2 %v769_v14  ;;  %469 = vmatpush.bf16.msra.mxu1 %v785_v18 }
  0x25   :  { %898 = vmatpush.bf16.msra.mxu3 %v785_v18 }
  0x27   :  { %289 = vmatpush.bf16.msra.mxu0 %v768_v19 }
  0x28   :  { %891 = vmatpush.bf16.msra.mxu2 %v768_v19  ;;  %470 = vmatpush.bf16.msra.mxu1 %v784_v20 }
  0x29   :  { %899 = vmatpush.bf16.msra.mxu3 %v784_v20  ;;  %154 = vperm.xlu0 %908, %v100_v23  }
  0x2a   :  { %159 = vperm.xlu1 %909, %v101_v31  }
  0x2b   :  { %290 = vmatpush.bf16.msra.mxu0 %v767_v22  ;;  %164 = vperm.xlu2 %910, %v102_v39  }
  0x2c   :  { %892 = vmatpush.bf16.msra.mxu2 %v767_v22  ;;  %471 = vmatpush.bf16.msra.mxu1 %v783_v24 }
  0x2d   :  { %900 = vmatpush.bf16.msra.mxu3 %v783_v24 }
  0x2e   :  { %291 = vmatmul.bf16.vlgmr.msra.gmra.mxu0 %v759_v25 }
  0x2f   :  { %311 = vmatmul.bf16.vlgmr.msra.gmra.mxu2 %v763_v26  ;;  %472 = vmatmul.bf16.vlgmr.msra.gmra.mxu1 %v775_v27 }
  0x30   :  { %492 = vmatmul.bf16.vlgmr.msra.gmra.mxu3 %v779_v28 }
  0x31   :  { %169 = vperm.xlu0 %908, %v103_v29  }
  0x32   :  { %174 = vperm.xlu1 %909, %v104_v33  }
  0x33   :  { %179 = vperm.xlu2 %910, %v105_v40  }
  0x39   :  { %184 = vperm.xlu0 %908, %v106_v34  }
  0x3e   :  { %296 = vmatmul.bf16.gmra.mxu0 %v760_v35 }
  0x3f   :  { %316 = vmatmul.bf16.gmra.mxu2 %v764_v36  ;;  %477 = vmatmul.bf16.gmra.mxu1 %v776_v37 }
  0x40   :  { %497 = vmatmul.bf16.gmra.mxu3 %v780_v38 }
  0x4e   :  { %301 = vmatmul.bf16.gmra.mxu0 %v761_v41 }
  0x4f   :  { %321 = vmatmul.bf16.gmra.mxu2 %v765_v42  ;;  %482 = vmatmul.bf16.gmra.mxu1 %v777_v43 }
  0x50   :  { %502 = vmatmul.bf16.gmra.mxu3 %v781_v44 }
  0x5e   :  { %306 = vmatmul.bf16.gmra.mxu0 %v762_v45 }
  0x5f   :  { %326 = vmatmul.bf16.gmra.mxu2 %v766_v46  ;;  %487 = vmatmul.bf16.gmra.mxu1 %v778_v47 }
  0x60   :  { %507 = vmatmul.bf16.gmra.mxu3 %v782_v48 }
  0x6d   :  { %v1171_v50 = vpop.permute.xlu2 %129 }
  0x75   :  { %v1173_v55 = vpop.permute.xlu2 %134 }
  0x7d   :  { %v150_v6 = vpop.permute.xlu2 %149 }
  0x83   :  { %v110_v49 = vpop.permute.xlu0 %109 }
  0x84   :  { %v120_v52 = vpop.permute.xlu1 %119 }
  0x85   :  { %v165_v36 = vpop.permute.xlu2 %164 }
  0x8b   :  { %v115_v51 = vpop.permute.xlu0 %114 }
  0x8c   :  { %v125_v62 = vpop.permute.xlu1 %124 }
  0x93   :  { %v1180_v57 = vpop.permute.xlu0 %139 }
  0x94   :  { %v1186_v20 = vpop.permute.xlu1 %144 }
  0x9b   :  { %v155_v9 = vpop.permute.xlu0 %154 }
  0x9c   :  { %v160_v33 = vpop.permute.xlu1 %159 }
  0xab   :  { %v292_v53 = vpop.f32.mrf.mxu0 }
  0xac   :  { %v473_v54 = vpop.f32.mrf.mxu1  ;;  %v293_v59 = vadd.f32 %v292_v53, %v110_v49 }
  0xad   :  { %v474_v61 = vadd.f32 %v1178_v56, %v473_v54 }
  0xaf   :  { %v545_v4 = vmul.f32 0.17677669, %v474_v61 }
  0xb2   :  { %v312_v58 = vpop.f32.mrf.mxu2 }
  0xb3   :  { %v493_v60 = vpop.f32.mrf.mxu3  ;;  %v294_v63 = vpop.f32.mrf.mxu0  ;;  %v313_v11 = vadd.f32 %v312_v58, %v150_v6 }
  0xb4   :  { %v475_v0 = vpop.f32.mrf.mxu1  ;;  %v295_v1 = vadd.f32 %v294_v63, %v115_v51  ;;  %v494_v7 = vadd.f32 %v1178_v56, %v493_v60  ;;  %v170_v63 = vpop.permute.xlu0 %169 }
  0xb5   :  { %v476_v2 = vadd.f32 %v1178_v56, %v475_v0  ;;  %v175_v0 = vpop.permute.xlu1 %174 }
  0xb6   :  { %v794_v3 = vpack.c.bf16 %v295_v1, %v293_v59  ;;  %v553_v18 = vmul.f32 0.17677669, %v494_v7 }
  0xb7   :  { %v546_v5 = vmul.f32 0.17677669, %v476_v2 }
  0xb8   :  { %795 = vst [vmem:[#allocation7] sm:$0xff] %v794_v3  }
  0xb9   :  { %v834_v8 = vpack.c.bf16 %v546_v5, %v545_v4 }
  0xba   :  { %v314_v10 = vpop.f32.mrf.mxu2 }
  0xbb   :  { %v315_v12 = vadd.f32 %v314_v10, %v155_v9  ;;  %v495_v13 = vpop.f32.mrf.mxu3  ;;  %835 = vst [vmem:[#allocation8] sm:$0xff] %v834_v8   ;;  %v297_v15 = vpop.f32.mrf.mxu0 }
  0xbc   :  { %v496_v14 = vadd.f32 %v1178_v56, %v495_v13  ;;  %v478_v17 = vpop.f32.mrf.mxu1  ;;  %v298_v23 = vadd.f32 %v297_v15, %v120_v52 }
  0xbd   :  { %v814_v16 = vpack.c.bf16 %v315_v12, %v313_v11  ;;  %v479_v25 = vadd.f32 %v1178_v56, %v478_v17 }
  0xbe   :  { %v554_v19 = vmul.f32 0.17677669, %v496_v14 }
  0xbf   :  { %874 = vst [vmem:[#allocation7 + $0x20] sm:$0xff] %v814_v16   ;;  %v547_v31 = vmul.f32 0.17677669, %v479_v25  ;;  %v180_v25 = vpop.permute.xlu2 %179 }
  0xc0   :  { %v854_v21 = vpack.c.bf16 %v554_v19, %v553_v18 }
  0xc2   :  { %881 = vst [vmem:[#allocation8 + $0x20] sm:$0xff] %v854_v21   ;;  %v317_v22 = vpop.f32.mrf.mxu2 }
  0xc3   :  { %v498_v24 = vpop.f32.mrf.mxu3  ;;  %v299_v26 = vpop.f32.mrf.mxu0  ;;  %v318_v38 = vadd.f32 %v317_v22, %v160_v33 }
  0xc4   :  { %v480_v27 = vpop.f32.mrf.mxu1  ;;  %v300_v28 = vadd.f32 %v299_v26, %v125_v62  ;;  %v499_v34 = vadd.f32 %v1178_v56, %v498_v24  ;;  %v185_v24 = vpop.permute.xlu0 %184 }
  0xc5   :  { %v481_v29 = vadd.f32 %v1178_v56, %v480_v27 }
  0xc6   :  { %v799_v30 = vpack.c.bf16 %v300_v28, %v298_v23  ;;  %v555_v45 = vmul.f32 0.17677669, %v499_v34 }
  0xc7   :  { %v548_v32 = vmul.f32 0.17677669, %v481_v29 }
  0xc8   :  { %871 = vst [vmem:[#allocation7 + $0x8] sm:$0xff] %v799_v30  }
  0xc9   :  { %v839_v35 = vpack.c.bf16 %v548_v32, %v547_v31 }
  0xca   :  { %v319_v37 = vpop.f32.mrf.mxu2 }
  0xcb   :  { %v320_v39 = vadd.f32 %v319_v37, %v165_v36  ;;  %v500_v40 = vpop.f32.mrf.mxu3  ;;  %878 = vst [vmem:[#allocation8 + $0x8] sm:$0xff] %v839_v35   ;;  %v302_v42 = vpop.f32.mrf.mxu0 }
  0xcc   :  { %v501_v41 = vadd.f32 %v1178_v56, %v500_v40  ;;  %v483_v44 = vpop.f32.mrf.mxu1  ;;  %v303_v53 = vadd.f32 %v302_v42, %v1171_v50 }
  0xcd   :  { %v819_v43 = vpack.c.bf16 %v320_v39, %v318_v38  ;;  %v484_v51 = vadd.f32 %v1178_v56, %v483_v44 }
  0xce   :  { %v556_v46 = vmul.f32 0.17677669, %v501_v41 }
  0xcf   :  { %875 = vst [vmem:[#allocation7 + $0x28] sm:$0xff] %v819_v43   ;;  %v549_v61 = vmul.f32 0.17677669, %v484_v51 }
  0xd0   :  { %v859_v47 = vpack.c.bf16 %v556_v46, %v555_v45 }
  0xd2   :  { %882 = vst [vmem:[#allocation8 + $0x28] sm:$0xff] %v859_v47   ;;  %v322_v48 = vpop.f32.mrf.mxu2 }
  0xd3   :  { %v503_v49 = vpop.f32.mrf.mxu3  ;;  %v304_v52 = vpop.f32.mrf.mxu0  ;;  %v323_v4 = vadd.f32 %v322_v48, %v170_v63 }
  0xd4   :  { %v305_v54 = vadd.f32 %v304_v52, %v1173_v55  ;;  %v485_v58 = vpop.f32.mrf.mxu1  ;;  %v504_v1 = vadd.f32 %v1178_v56, %v503_v49 }
  0xd5   :  { %v486_v59 = vadd.f32 %v1178_v56, %v485_v58 }
  0xd6   :  { %v804_v60 = vpack.c.bf16 %v305_v54, %v303_v53  ;;  %v557_v9 = vmul.f32 0.17677669, %v504_v1 }
  0xd7   :  { %v550_v62 = vmul.f32 0.17677669, %v486_v59 }
  0xd8   :  { %872 = vst [vmem:[#allocation7 + $0x10] sm:$0xff] %v804_v60  }
  0xd9   :  { %v844_v2 = vpack.c.bf16 %v550_v62, %v549_v61 }
  0xda   :  { %v324_v3 = vpop.f32.mrf.mxu2 }
  0xdb   :  { %v325_v5 = vadd.f32 %v324_v3, %v175_v0  ;;  %v505_v6 = vpop.f32.mrf.mxu3  ;;  %879 = vst [vmem:[#allocation8 + $0x10] sm:$0xff] %v844_v2   ;;  %v307_v55 = vpop.f32.mrf.mxu0 }
  0xdc   :  { %v506_v50 = vadd.f32 %v1178_v56, %v505_v6  ;;  %v488_v8 = vpop.f32.mrf.mxu1  ;;  %v308_v16 = vadd.f32 %v307_v55, %v1180_v57 }
  0xdd   :  { %v824_v7 = vpack.c.bf16 %v325_v5, %v323_v4  ;;  %v489_v14 = vadd.f32 %v1178_v56, %v488_v8 }
  0xde   :  { %v558_v10 = vmul.f32 0.17677669, %v506_v50 }
  0xdf   :  { %876 = vst [vmem:[#allocation7 + $0x30] sm:$0xff] %v824_v7   ;;  %v551_v22 = vmul.f32 0.17677669, %v489_v14 }
  0xe0   :  { %v864_v11 = vpack.c.bf16 %v558_v10, %v557_v9 }
  0xe2   :  { %883 = vst [vmem:[#allocation8 + $0x30] sm:$0xff] %v864_v11   ;;  %v327_v12 = vpop.f32.mrf.mxu2 }
  0xe3   :  { %v508_v13 = vpop.f32.mrf.mxu3  ;;  %v309_v15 = vpop.f32.mrf.mxu0  ;;  %v328_v57 = vadd.f32 %v327_v12, %v180_v25 }
  0xe4   :  { %v310_v17 = vadd.f32 %v309_v15, %v1186_v20  ;;  %v490_v18 = vpop.f32.mrf.mxu1  ;;  %v509_v26 = vadd.f32 %v1178_v56, %v508_v13 }
  0xe5   :  { %v491_v19 = vadd.f32 %v1178_v56, %v490_v18 }
  0xe6   :  { %v809_v21 = vpack.c.bf16 %v310_v17, %v308_v16  ;;  %v559_v32 = vmul.f32 0.17677669, %v509_v26 }
  0xe7   :  { %v552_v23 = vmul.f32 0.17677669, %v491_v19 }
  0xe8   :  { %873 = vst [vmem:[#allocation7 + $0x18] sm:$0xff] %v809_v21  }
  0xe9   :  { %v849_v27 = vpack.c.bf16 %v552_v23, %v551_v22 }
  0xea   :  { %v329_v28 = vpop.f32.mrf.mxu2 }
  0xeb   :  { %v330_v20 = vadd.f32 %v329_v28, %v185_v24  ;;  %v510_v29 = vpop.f32.mrf.mxu3  ;;  %880 = vst [vmem:[#allocation8 + $0x18] sm:$0xff] %v849_v27  }
  0xec   :  { %v511_v30 = vadd.f32 %v1178_v56, %v510_v29 }
  0xed   :  { %v829_v31 = vpack.c.bf16 %v330_v20, %v328_v57 }
  0xee   :  { %v560_v33 = vmul.f32 0.17677669, %v511_v30 }
  0xef   :  { %877 = vst [vmem:[#allocation7 + $0x38] sm:$0xff] %v829_v31  }
  0xf0   :  { %v869_v34 = vpack.c.bf16 %v560_v33, %v559_v32  ;;  %605 = dma.vmem_to_hbm [thread:$0]  %s598_s5, 1024, %s600_s30, [#allocation4], %s1017_s9, %s1017_s9, %s1018_s10  }
  0xf2   :  { %884 = vst [vmem:[#allocation8 + $0x38] sm:$0xff] %v869_v34  }
  0xf3   :  { %618 = dma.vmem_to_hbm [thread:$0]  %s611_s11, 1024, %s613_s4, [#allocation9], %s1017_s9, %s1017_s9, %s1018_s10  }
  0xf4   :  { %1012 = dma.done.wait [#allocation4], 1024  }
  0xf5   :  { %1013 = vsyncadd [#allocation4], 4294966272 }
  0xf6   :  { %1014 = dma.done.wait [#allocation9], 1024  }
  0xf7   :  { %1015 = vsyncadd [#allocation9], 4294966272 }
  0xf8   :  { %627 = vsyncpa [#allocation3], 1 }
  0xf9   :  { %628 = vsyncpa [#allocation6], 1 }
  0xfa   :  { %629 = vsyncpa [#allocation4], 1 }
  0xfb   :  { %630 = vsyncpa [#allocation9], 1 }

</bundles_post_ra>
